<compile_context>
chip_gen: v6e
topology: v6e:2x2x1
jax: 0.10.0
libtpu: 0.0.40
codegen_flags: <defaults>
</compile_context>

<pallas_src>
import jax
import jax.numpy as jnp
from jax.experimental import pallas as pl
from jax.experimental.pallas import tpu as pltpu


def _round_up(x: int, m: int) -> int:
    return (x + m - 1) // m * m


def _resize_matrix(out_size: int, in_size: int) -> jnp.ndarray:
    """Bilinear interpolation matrix (out_size, in_size), align_corners=True."""
    if out_size == 1:
        src = jnp.zeros((1,), jnp.float32)
    else:
        src = jnp.arange(out_size, dtype=jnp.float32) * (
            (in_size - 1) / (out_size - 1))
    i0 = jnp.clip(jnp.floor(src), 0, in_size - 1).astype(jnp.int32)
    i1 = jnp.clip(i0 + 1, 0, in_size - 1)
    w = src - i0.astype(jnp.float32)
    m0 = jax.nn.one_hot(i0, in_size, dtype=jnp.float32) * (1.0 - w)[:, None]
    m1 = jax.nn.one_hot(i1, in_size, dtype=jnp.float32) * w[:, None]
    return m0 + m1


# ----------------------------- Pallas kernel --------------------------------
def _norm_resize_kernel(p_ref, x_ref, k_ref, o_ref):
    """Fused per-row affine+clip, then one (TM, P) @ (P, TQ) MXU matmul.

    p_ref : (TM, 4)  f32   packed per-row [scale, bias, lo, hi]
    x_ref : (TM, P)  f32   flattened rows (one row = one (sample, band))
    k_ref : (P, TQ)  bf16  Kronecker bilinear-resize operator tile
    o_ref : (TM, TQ) f32
    """
    p = p_ref[...]
    scale, bias = p[:, 0:1], p[:, 1:2]
    lo, hi = p[:, 2:3], p[:, 3:4]
    # fused: quantile clamp (s1) + soft-con normalize + clamp[0,1]  (f32 VPU)
    x = jnp.clip(x_ref[...] * scale + bias, lo, hi)
    # bf16 operands, f32 accumulation on the MXU
    o_ref[...] = jnp.dot(x.astype(jnp.bfloat16), k_ref[...],
                         preferred_element_type=jnp.float32)


_KMAT_TILE_BUDGET = 8 * 1024 * 1024   # bytes of VMEM for one kmat tile


def _kmat_block_spec(P, tq, single_buffer):
    idx = lambda m, q: (0, q)
    if single_buffer:
        try:
            # kmat never changes across the grid -> single buffer saves P*TQ*2 B.
            return pl.BlockSpec((P, tq), idx, pipeline_mode=pl.Buffered(1))
        except TypeError:          # older BlockSpec without pipeline_mode kwarg
            pass
    return pl.BlockSpec((P, tq), idx)


def fused_normalize_resize(params, x, kmat):
    """params (M, 4) f32, x (M, P) f32, kmat (P, Q) -> (M, Q) f32."""
    M, P = x.shape
    Q = kmat.shape[1]
    kmat = kmat.astype(jnp.bfloat16)

    # --- M tile: batch many rows per step (amortize ~0.35us step overhead,
    #     fill the 128/256-row MXU).
    tm = min(256, _round_up(M, 8))
    if M > 128 and _round_up(M, tm) == tm:
        # split into >=2 grid steps so v7x's second TensorCore gets work
        tm = _round_up((M + 1) // 2, 8)
    mp = _round_up(M, tm)

    # --- Q tile: lane-dense (multiple of 128). Tile kmat when a full (P, Q)
    #     slab would blow the VMEM budget (production resolutions).
    qp = _round_up(Q, 128)
    if P * qp * 2 <= _KMAT_TILE_BUDGET:
        tq = qp
    else:
        tq = max(128, (_KMAT_TILE_BUDGET // (2 * P * 2)) // 128 * 128)
        qp = _round_up(qp, tq)

    if mp != M:
        x = jnp.pad(x, ((0, mp - M), (0, 0)))
        params = jnp.pad(params, ((0, mp - M), (0, 0)))   # zero params -> zero rows
    if qp != Q:
        kmat = jnp.pad(kmat, ((0, 0), (0, qp - Q)))       # zero columns

    grid = (mp // tm, qp // tq)
    out = pl.pallas_call(
        _norm_resize_kernel,
        out_shape=jax.ShapeDtypeStruct((mp, qp), jnp.float32),
        grid=grid,
        in_specs=[
            pl.BlockSpec((tm, 4), lambda m, q: (m, 0)),   # packed params
            pl.BlockSpec((tm, P), lambda m, q: (m, 0)),   # flattened image rows
            _kmat_block_spec(P, tq, single_buffer=(grid[1] == 1)),
        ],
        out_specs=pl.BlockSpec((tm, tq), lambda m, q: (m, q)),
        compiler_params=pltpu.CompilerParams(
            dimension_semantics=("parallel", "parallel")),
    )(params, x, kmat)
    return out[:M, :Q]


class ClsDataAugmentationSoftCon:
    """JAX/Pallas port of the torch module (forward semantics only)."""

    def __init__(self, split, size, modality, band_stats, *, rng=None):
        self.split = split
        self.modality = modality
        self.size = (size, size) if isinstance(size, int) else tuple(size)
        if band_stats is not None:
            self.mean = jnp.asarray(band_stats["mean"], jnp.float32)
            self.std = jnp.asarray(band_stats["std"], jnp.float32)
        else:
            self.mean = jnp.asarray([0.0], jnp.float32)
            self.std = jnp.asarray([1.0], jnp.float32)
        # fresh flip decision per forward call (torch module is stochastic)
        self._key = rng if rng is not None else jax.random.PRNGKey(0)

    def _next_key(self):
        self._key, sub = jax.random.split(self._key)
        return sub

    def _band_affine(self, nb):
        mean = jnp.broadcast_to(self.mean[:nb], (nb,)).astype(jnp.float32)
        std = jnp.broadcast_to(self.std[:nb], (nb,)).astype(jnp.float32)
        minv = mean - 2.0 * std
        rng4 = 4.0 * std
        scale = jnp.where(rng4 > 0.0, 1.0 / rng4, 0.0)   # guard std == 0
        bias = -minv * scale
        return scale, bias, minv

    def batch_images(self, images):
        """Transform a stack of images (N, C_in, H, W) with one kernel call.
        Note: with split='train', one flip draw is shared by the whole batch."""
        images = jnp.asarray(images, jnp.float32)
        N = images.shape[0]
        Hin, Win = images.shape[-2:]
        Hout, Wout = self.size
        P = Hin * Win

        if self.modality == "s1":
            C = 2
            flat = images[:, :2].reshape(N, C, P)
            x_rows = flat.reshape(N * C, P)
            # TODO(synk): torch.quantile is a sort-based reduction with no clean
            # Pallas TPU equivalent; jnp.quantile (same 'linear' rule) computes the
            # per-sample bounds that feed the kernel's fused clip.
            hi_q = jnp.quantile(flat, 0.99, axis=2).astype(jnp.float32)   # (N, C)
            lo_q = jnp.quantile(flat, 0.01, axis=2).astype(jnp.float32)
            scale, bias, minv = self._band_affine(2)
            # fold quantile clamp + [0,1] clamp into one clip on normalized values
            lo = jnp.clip((lo_q - minv) * scale, 0.0, 1.0)
            hi = jnp.clip((hi_q - minv) * scale, 0.0, 1.0)
            params = jnp.stack(
                [jnp.broadcast_to(scale, (N, C)),
                 jnp.broadcast_to(bias, (N, C)), lo, hi], axis=-1)        # (N, C, 4)
        elif self.modality == "s2":
            C = 13
            # Band 10 of the kernel input is a dummy channel zeroed in-kernel
            # (scale = bias = lo = hi = 0) -> the zero band torch inserts after b==9.
            # TODO(synk): at production resolutions this concatenate is an extra HBM
            # pass; a scalar-prefetch row-index map would let the kernel gather the
            # 13 rows straight out of the 12-channel input.
            x13 = jnp.concatenate(
                [images[:, :10], images[:, :1], images[:, 10:12]], axis=1)
            x_rows = x13.reshape(N * C, P)
            scale, bias, _ = self._band_affine(12)
            ins = lambda v, fill: jnp.concatenate(
                [v[:10], jnp.full((1,), fill, jnp.float32), v[10:]])
            scale13 = ins(scale, 0.0)
            bias13 = ins(bias, 0.0)
            lo13 = jnp.zeros((C,), jnp.float32)
            hi13 = ins(jnp.ones((12,), jnp.float32), 0.0)
            params = jnp.broadcast_to(
                jnp.stack([scale13, bias13, lo13, hi13], axis=-1), (N, C, 4))
        else:
            raise ValueError(self.modality)

        a_mat = _resize_matrix(Hout, Hin)    # rows -> output height
        b_mat = _resize_matrix(Wout, Win)    # rows -> output width
        if self.split == "train":
            kh, kv = jax.random.split(self._next_key())
            hflip = jax.random.bernoulli(kh, 0.5)
            vflip = jax.random.bernoulli(kv, 0.5)
            # resize-then-flip == reversing the OUTPUT rows/cols, i.e. the rows
            # of the interpolation matrices (exact; no symmetry assumption).
            a_mat = jnp.where(vflip, a_mat[::-1, :], a_mat)
            b_mat = jnp.where(hflip, b_mat[::-1, :], b_mat)
        # Kronecker resize operator:
        #   Y[r, i*Wout+j] = sum_{h,w} X[r, h*Win+w] * A[i,h] * B[j,w]
        # TODO(synk): for large resolutions switch to the separable A @ X @ B^T
        # two-matmul form (kmat is O(Hin^2 * Hout^2) and stops fitting VMEM).
        kmat = jnp.einsum("ih,jw->hwij", a_mat, b_mat).reshape(P, Hout * Wout)

        out = fused_normalize_resize(
            jnp.asarray(params, jnp.float32).reshape(N * C, 4), x_rows, kmat)
        return out.reshape(N, C, Hout, Wout)

    def __call__(self, sample):
        img = jnp.asarray(sample["image"], jnp.float32)
        out = self.batch_images(img[None])[0]
        return out, sample["label"], sample["meta"]


if __name__ == "__main__":
    key = jax.random.PRNGKey(0)
    k1, k2, k3 = jax.random.split(key, 3)

    # ---- s2 path (eval split: normalize + in-kernel zero band + resize) ----
    img_s2 = jax.random.uniform(k1, (12, 16, 16), jnp.float32, 0.0, 3000.0)
    band_stats_s2 = {
        "mean": [1000.0 + 100.0 * i for i in range(12)],
        "std": [500.0 + 10.0 * i for i in range(12)],
    }
    aug_s2 = ClsDataAugmentationSoftCon("test", 24, "s2", band_stats_s2)
    sample = {"image": img_s2, "label": jnp.array(3, jnp.int32), "meta": {"id": 0}}
    x_out, label, meta = aug_s2(sample)
    x_out = jax.block_until_ready(x_out)
    assert x_out.shape == (13, 24, 24)
    assert bool(jnp.all(x_out[10] == 0.0))

    # pure-jnp f32 reference for the s2 eval path (kernel matmul runs in bf16)
    mean = jnp.asarray(band_stats_s2["mean"], jnp.float32)
    std = jnp.asarray(band_stats_s2["std"], jnp.float32)
    mn = (mean - 2 * std)[:, None, None]
    mx = (mean + 2 * std)[:, None, None]
    xn = jnp.clip((img_s2 - mn) / (mx - mn), 0.0, 1.0)
    A = _resize_matrix(24, 16)
    B = _resize_matrix(24, 16)
    ref12 = jnp.einsum("oh,chw,pw->cop", A, xn, B)
    ref = jnp.concatenate(
        [ref12[:10], jnp.zeros((1, 24, 24), jnp.float32), ref12[10:]], axis=0)
    assert bool(jnp.allclose(x_out, ref, atol=2e-2, rtol=2e-2))

    # ---- s1 path (train split: quantile clamp + flips folded into resize) --
    img_s1 = jax.random.normal(k2, (2, 16, 16), jnp.float32) * 5.0 - 15.0
    band_stats_s1 = {"mean": [-12.59, -20.26], "std": [5.26, 5.91]}
    aug_s1 = ClsDataAugmentationSoftCon(
        "train", 24, "s1", band_stats_s1, rng=jax.random.PRNGKey(42))
    out_s1, _, _ = aug_s1({"image": img_s1, "label": jnp.array(1), "meta": {}})
    out_s1 = jax.block_until_ready(out_s1)
    assert out_s1.shape == (2, 24, 24)

    # pure-jnp reference (reproduce the module's internal key schedule)
    sub = jax.random.split(jax.random.PRNGKey(42))[1]
    kh, kv = jax.random.split(sub)
    hflip = jax.random.bernoulli(kh, 0.5)
    vflip = jax.random.bernoulli(kv, 0.5)
    flat = img_s1.reshape(2, -1)
    hi_q = jnp.quantile(flat, 0.99, axis=1)[:, None, None]
    lo_q = jnp.quantile(flat, 0.01, axis=1)[:, None, None]
    mean1 = jnp.asarray(band_stats_s1["mean"], jnp.float32)
    std1 = jnp.asarray(band_stats_s1["std"], jnp.float32)
    mn1 = (mean1 - 2 * std1)[:, None, None]
    mx1 = (mean1 + 2 * std1)[:, None, None]
    xc = jnp.clip(img_s1, lo_q, hi_q)
    xn1 = jnp.clip((xc - mn1) / (mx1 - mn1), 0.0, 1.0)
    ref1 = jnp.einsum("oh,chw,pw->cop", A, xn1, B)
    ref1 = jnp.where(vflip, ref1[:, ::-1, :], ref1)
    ref1 = jnp.where(hflip, ref1[:, :, ::-1], ref1)
    assert bool(jnp.allclose(out_s1, ref1, atol=2e-2, rtol=2e-2))

    # ---- batched s2 eval: single kernel call, M-tiled over (N*C) rows ------
    img_s2_b = jnp.stack(
        [img_s2, jax.random.uniform(k3, (12, 16, 16), jnp.float32, 0.0, 3000.0)])
    out_b = jax.block_until_ready(aug_s2.batch_images(img_s2_b))
    assert out_b.shape == (2, 13, 24, 24)
    x1, _, _ = aug_s2({"image": img_s2_b[1], "label": 0, "meta": {}})
    assert bool(jnp.allclose(out_b[0], x_out, atol=1e-5, rtol=1e-5))
    assert bool(jnp.allclose(out_b[1], x1, atol=1e-5, rtol=1e-5))

    print("KERNEL_OK")
</pallas_src>

<mosaic_0001>
module attributes {stable_mosaic.version = 11 : i64} {
  func.func @_norm_resize_kernel(%arg0: i32, %arg1: i32, %arg2: memref<16x4xf32, #tpu.memory_space<vmem>>, %arg3: memref<16x256xf32, #tpu.memory_space<vmem>>, %arg4: memref<256x640xbf16, #tpu.memory_space<vmem>>, %arg5: memref<16x640xf32, #tpu.memory_space<vmem>>) attributes {dimension_semantics = [#tpu.dimension_semantics<parallel>, #tpu.dimension_semantics<parallel>], iteration_bounds = array<i64: 1, 1>, scalar_prefetch = 0 : i64, scratch_operands = 0 : i64, tpu.core_type = #tpu.core_type<tc>, window_params = [{transform_indices = @transform_0, window_bounds = array<i64: 16, 4>}, {transform_indices = @transform_1, window_bounds = array<i64: 16, 256>}, {pipeline_mode = #tpu.pipeline_mode<synchronous>, transform_indices = @transform_2, window_bounds = array<i64: 256, 640>}, {transform_indices = @transform_3, window_bounds = array<i64: 16, 640>}]} {
    %c0 = arith.constant 0 : index
    %c0_0 = arith.constant 0 : index
    %0 = vector.load %arg2[%c0, %c0_0] : memref<16x4xf32, #tpu.memory_space<vmem>>, vector<16x4xf32>
    %1 = vector.extract_strided_slice %0 {offsets = [0, 0], sizes = [16, 1], strides = [1, 1]} : vector<16x4xf32> to vector<16x1xf32>
    %2 = vector.extract_strided_slice %0 {offsets = [0, 1], sizes = [16, 1], strides = [1, 1]} : vector<16x4xf32> to vector<16x1xf32>
    %3 = vector.extract_strided_slice %0 {offsets = [0, 2], sizes = [16, 1], strides = [1, 1]} : vector<16x4xf32> to vector<16x1xf32>
    %4 = vector.extract_strided_slice %0 {offsets = [0, 3], sizes = [16, 1], strides = [1, 1]} : vector<16x4xf32> to vector<16x1xf32>
    %c0_1 = arith.constant 0 : index
    %c0_2 = arith.constant 0 : index
    %5 = vector.load %arg3[%c0_1, %c0_2] : memref<16x256xf32, #tpu.memory_space<vmem>>, vector<16x256xf32>
    %6 = vector.broadcast %1 : vector<16x1xf32> to vector<16x256xf32>
    %7 = arith.mulf %5, %6 : vector<16x256xf32>
    %8 = vector.broadcast %2 : vector<16x1xf32> to vector<16x256xf32>
    %9 = arith.addf %7, %8 : vector<16x256xf32>
    %10 = vector.broadcast %3 : vector<16x1xf32> to vector<16x256xf32>
    %11 = arith.maximumf %10, %9 : vector<16x256xf32>
    %12 = vector.broadcast %4 : vector<16x1xf32> to vector<16x256xf32>
    %13 = arith.minimumf %12, %11 : vector<16x256xf32>
    %14 = arith.truncf %13 : vector<16x256xf32> to vector<16x256xbf16>
    %c0_3 = arith.constant 0 : index
    %c0_4 = arith.constant 0 : index
    %15 = vector.load %arg4[%c0_3, %c0_4] : memref<256x640xbf16, #tpu.memory_space<vmem>>, vector<256x640xbf16>
    %cst = arith.constant dense<0.000000e+00> : vector<16x640xf32>
    %16 = tpu.matmul %14, %15, %cst {dimension_numbers = #tpu.dot_dimension_numbers<[1], [0], [0], [1], [0, 0, 1, 1], [], []>} : vector<16x256xbf16>, vector<256x640xbf16>, vector<16x640xf32> -> vector<16x640xf32>
    %c0_5 = arith.constant 0 : index
    %c0_6 = arith.constant 0 : index
    %17 = vector.load %arg5[%c0_5, %c0_6] : memref<16x640xf32, #tpu.memory_space<vmem>>, vector<16x640xf32>
    tpu.vector_store %arg5[%c0_5, %c0_6], %16 {strides = array<i32>} : memref<16x640xf32, #tpu.memory_space<vmem>>, vector<16x640xf32>,
    return
  }
  func.func @transform_0(%arg0: i32, %arg1: i32) -> (i32, i32) {
    %c0_i32 = arith.constant 0 : i32
    %c0_i32_0 = arith.constant 0 : i32
    return %arg0, %c0_i32 : i32, i32
  }
  func.func @transform_1(%arg0: i32, %arg1: i32) -> (i32, i32) {
    %c0_i32 = arith.constant 0 : i32
    %c0_i32_0 = arith.constant 0 : i32
    return %arg0, %c0_i32 : i32, i32
  }
  func.func @transform_2(%arg0: i32, %arg1: i32) -> (i32, i32) {
    %c0_i32 = arith.constant 0 : i32
    %c0_i32_0 = arith.constant 0 : i32
    return %c0_i32, %arg1 : i32, i32
  }
  func.func @transform_3(%arg0: i32, %arg1: i32) -> (i32, i32) {
    %c0_i32 = arith.constant 0 : i32
    return %arg0, %arg1 : i32, i32
  }
}

</mosaic_0001>

<bundles_post_ra>
// kernel: tpu_custom_call.1
= control target key start
LH: loop header
LB: loop body
LE: loop exit
PB: predicated region body
PF: predicated region fallthrough
CT: control target
= control target key end

     0   :  { %8 = vsyncpa [#allocation3], 0  ;;  %s1125_s0 = inlined_call_operand.vmem [shape: f32[16,4], index: 0, kind: input, shape index: {}]   ;;  %s1126_s1 = inlined_call_operand.hbm [shape: f32[16,256], index: 1, kind: input, shape index: {}]   ;;  %s1127_s2 = inlined_call_operand.hbm [shape: bf16[256,640], index: 2, kind: input, shape index: {}]   ;;  %s1128_s3 = inlined_call_operand.hbm [shape: f32[16,640], index: 3, kind: output, shape index: {}]  }
   0x1   :  { %9 = vsyncpa [#allocation6], 0 }
   0x2   :  { %10 = vsyncpa [#allocation4], 0  ;;  %s1077_s12 = smov [#allocation2]  }
   0x3   :  { %s18_s13 = sshll.u32 %s1077_s12, 4  ;;  %s19_s13 = int_to_ptr.vmem [resolvable:$true] %s18_s13 }
   0x4   :  { %s1019_s14 = scalar_lea.vmem %s19_s13, 512  ;;  %p1024_p1 = scmp.lt.s32.totalorder %s19_s13, %s19_s13 }
   0x5   :  { %p1020_p0 = scmp.ne.s32.totalorder %s19_s13, %s1019_s14  ;;  %p1025_p2 = scmp.lt.s32.totalorder %s1019_s14, %s1019_s14 }
   0x7   :  { %p1026_p3 = por %p1025_p2, %p1024_p1 }
   0x9   :  { %p1027_p4 = pnand %p1026_p3, %p1020_p0 }
   0xb   :  { %1030 = shalt.err (!%p1027_p4)
}
   0xc   :  { %s1078_s15 = smov 256   ;;  %s1079_s16 = smov 16  }
   0xd   :  { %24 = dma.hbm_to_vmem [thread:$0]  %s1126_s1, 512, %s19_s13, [#allocation3], %s1078_s15, %s1078_s15, %s1079_s16  }
   0xe   :  { %s1080_s19 = smov [#allocation5]  }
   0xf   :  { %s30_s20 = sshll.u32 %s1080_s19, 4  ;;  %s31_s20 = int_to_ptr.vmem [resolvable:$true] %s30_s20 }
  0x10   :  { %s1039_s21 = scalar_lea.vmem %s31_s20, 10240  ;;  %p1044_p6 = scmp.lt.s32.totalorder %s31_s20, %s31_s20 }
  0x11   :  { %p1040_p5 = scmp.ne.s32.totalorder %s31_s20, %s1039_s21  ;;  %p1045_p7 = scmp.lt.s32.totalorder %s1039_s21, %s1039_s21 }
  0x13   :  { %p1046_p8 = por %p1045_p7, %p1044_p6 }
  0x15   :  { %p1047_p9 = pnand %p1046_p8, %p1040_p5 }
  0x17   :  { %1050 = shalt.err (!%p1047_p9)
}
  0x18   :  { %s1081_s22 = smov 320   ;;  %s1082_s23 = smov 20  }
  0x19   :  { %36 = dma.hbm_to_vmem [thread:$0]  %s1127_s2, 10240, %s31_s20, [#allocation6], %s1081_s22, %s1081_s22, %s1082_s23  }
  0x1a   :  { %1071 = dma.done.wait [#allocation3], 512  }
  0x1b   :  { %1072 = vsyncadd [#allocation3], 4294966784 }
  0x1c   :  { %1073 = dma.done.wait [#allocation6], 10240  }
  0x1d   :  { %1074 = vsyncadd [#allocation6], 4294957056  ;;  %v1083_v0 = vmov 1   ;;  %v1084_v1 = vmov 0   ;;  %v44_v2 = vld [vmem:[%s1125_s0] sm:$0xff]  ;;  %v45_v3 = vld [vmem:[%s1125_s0 + $0x8] sm:$0xff] }
  0x1e   :  { %885 = vset.pattern.permute.xlu1 %v1083_v0  ;;  %884 = vset.pattern.permute.xlu0 %v1084_v1  ;;  %v899_v4 = vld [vmem:[#allocation5 + $0x11c] ss:$20 sps:$4 sm:$0xff]   ;;  %v901_v5 = vld [vmem:[#allocation5 + $0x118] ss:$20 sps:$4 sm:$0xff]   ;;  %v904_v7 = vld [vmem:[#allocation5 + $0x120] ss:$20 sps:$4 sm:$0xff]   ;;  %v887_v11 = vpack.i.bf16 %v45_v3, %v44_v2 }
  0x1f   :  { %65 = vperm.xlu1 %885, %v44_v2   ;;  %52 = vperm.xlu0 %884, %v44_v2   ;;  %v902_v6 = vld [vmem:[#allocation5 + $0x124] ss:$20 sps:$4 sm:$0xff]   ;;  %v905_v8 = vld [vmem:[#allocation5 + $0xf4] ss:$20 sps:$4 sm:$0xff]   ;;  %v908_v10 = vld [vmem:[#allocation5 + $0xfc] ss:$20 sps:$4 sm:$0xff]  }
  0x20   :  { %614 = vmatprep.subr.bf16.mxu0 %v899_v4  ;;  %657 = vmatprep.subr.bf16.mxu1 %v902_v6  ;;  %v907_v9 = vld [vmem:[#allocation5 + $0xf0] ss:$20 sps:$4 sm:$0xff]   ;;  %v910_v12 = vld [vmem:[#allocation5 + $0xf8] ss:$20 sps:$4 sm:$0xff]   ;;  %v913_v14 = vld [vmem:[#allocation5 + $0xc8] ss:$20 sps:$4 sm:$0xff]  }
  0x21   :  { %615 = vmatpush1.bf16.msra.mxu0 %v901_v5  ;;  %658 = vmatpush1.bf16.msra.mxu1 %v904_v7  ;;  %v911_v13 = vld [vmem:[#allocation5 + $0xcc] ss:$20 sps:$4 sm:$0xff]   ;;  %v914_v15 = vld [vmem:[#allocation5 + $0xd4] ss:$20 sps:$4 sm:$0xff]   ;;  %v1085_v16 = vmov 2   ;;  %v1086_v17 = vmov 3  }
  0x22   :  { %616 = vmatprep.subr.bf16.mxu0 %v905_v8  ;;  %659 = vmatprep.subr.bf16.mxu1 %v908_v10  ;;  %v917_v18 = vld [vmem:[#allocation5 + $0xa4] ss:$20 sps:$4 sm:$0xff]   ;;  %v919_v20 = vld [vmem:[#allocation5 + $0xa0] ss:$20 sps:$4 sm:$0xff]   ;;  %v923_v22 = vld [vmem:[#allocation5 + $0x7c] ss:$20 sps:$4 sm:$0xff]  }
  0x23   :  { %69 = vperm.xlu1 %885, %v45_v3   ;;  %57 = vperm.xlu0 %884, %v45_v3   ;;  %v916_v19 = vld [vmem:[#allocation5 + $0xd0] ss:$20 sps:$4 sm:$0xff]   ;;  %v920_v21 = vld [vmem:[#allocation5 + $0xac] ss:$20 sps:$4 sm:$0xff]   ;;  %v922_v23 = vld [vmem:[#allocation5 + $0xa8] ss:$20 sps:$4 sm:$0xff]  }
  0x24   :  { %v925_v24 = vld [vmem:[#allocation5 + $0x78] ss:$20 sps:$4 sm:$0xff]   ;;  %v929_v26 = vld [vmem:[#allocation5 + $0x54] ss:$20 sps:$4 sm:$0xff]   ;;  %v931_v28 = vld [vmem:[#allocation5 + $0x50] ss:$20 sps:$4 sm:$0xff]  }
  0x25   :  { %617 = vmatpush1.bf16.msra.mxu0 %v907_v9  ;;  %660 = vmatpush1.bf16.msra.mxu1 %v910_v12  ;;  %v926_v25 = vld [vmem:[#allocation5 + $0x84] ss:$20 sps:$4 sm:$0xff]   ;;  %v928_v27 = vld [vmem:[#allocation5 + $0x80] ss:$20 sps:$4 sm:$0xff]   ;;  %v932_v29 = vld [vmem:[#allocation5 + $0x5c] ss:$20 sps:$4 sm:$0xff]  }
  0x26   :  { %618 = vmatprep.subr.bf16.mxu0 %v911_v13  ;;  %661 = vmatprep.subr.bf16.mxu1 %v914_v15  ;;  %v935_v30 = vld [vmem:[#allocation5 + $0x2c] ss:$20 sps:$4 sm:$0xff]   ;;  %v937_v32 = vld [vmem:[#allocation5 + $0x28] ss:$20 sps:$4 sm:$0xff]   ;;  %v941_v34 = vld [vmem:[#allocation5 + $0x4] ss:$20 sps:$4 sm:$0xff]  }
  0x27   :  { %886 = vset.pattern.permute.xlu0 %v1085_v16  ;;  %892 = vset.pattern.permute.xlu1 %v1086_v17  ;;  %v934_v31 = vld [vmem:[#allocation5 + $0x58] ss:$20 sps:$4 sm:$0xff]   ;;  %v938_v33 = vld [vmem:[#allocation5 + $0x34] ss:$20 sps:$4 sm:$0xff]   ;;  %v940_v35 = vld [vmem:[#allocation5 + $0x30] ss:$20 sps:$4 sm:$0xff]  }
  0x28   :  { %888 = vperm.xlu0 %886, %v887_v11   ;;  %894 = vperm.xlu1 %892, %v887_v11   ;;  %v943_v36 = vld [vmem:[#allocation5] ss:$20 sps:$4 sm:$0xff]   ;;  %v947_v38 = vld [vmem:[#allocation5 + $0x25c] ss:$20 sps:$4 sm:$0xff]   ;;  %v949_v40 = vld [vmem:[#allocation5 + $0x258] ss:$20 sps:$4 sm:$0xff]  }
  0x29   :  { %619 = vmatpush1.bf16.msra.mxu0 %v913_v14  ;;  %662 = vmatpush1.bf16.msra.mxu1 %v916_v19  ;;  %v944_v37 = vld [vmem:[#allocation5 + $0xc] ss:$20 sps:$4 sm:$0xff]   ;;  %v946_v39 = vld [vmem:[#allocation5 + $0x8] ss:$20 sps:$4 sm:$0xff]   ;;  %v950_v41 = vld [vmem:[#allocation5 + $0x264] ss:$20 sps:$4 sm:$0xff]  }
  0x2a   :  { %620 = vmatprep.subr.bf16.mxu0 %v917_v18  ;;  %663 = vmatprep.subr.bf16.mxu1 %v920_v21  ;;  %v953_v42 = vld [vmem:[#allocation5 + $0x234] ss:$20 sps:$4 sm:$0xff]   ;;  %v955_v44 = vld [vmem:[#allocation5 + $0x230] ss:$20 sps:$4 sm:$0xff]   ;;  %v959_v46 = vld [vmem:[#allocation5 + $0x20c] ss:$20 sps:$4 sm:$0xff]  }
  0x2b   :  { %v952_v43 = vld [vmem:[#allocation5 + $0x260] ss:$20 sps:$4 sm:$0xff]   ;;  %v956_v45 = vld [vmem:[#allocation5 + $0x23c] ss:$20 sps:$4 sm:$0xff]   ;;  %v958_v47 = vld [vmem:[#allocation5 + $0x238] ss:$20 sps:$4 sm:$0xff]  }
  0x2c   :  { %898 = vset.pattern.permute.xlu0 %v1086_v17  ;;  %v961_v48 = vld [vmem:[#allocation5 + $0x208] ss:$20 sps:$4 sm:$0xff]   ;;  %v965_v50 = vld [vmem:[#allocation5 + $0x1e4] ss:$20 sps:$4 sm:$0xff]   ;;  %v967_v52 = vld [vmem:[#allocation5 + $0x1e0] ss:$20 sps:$4 sm:$0xff]  }
  0x2d   :  { %621 = vmatpush1.bf16.msra.mxu0 %v919_v20  ;;  %664 = vmatpush1.bf16.msra.mxu1 %v922_v23  ;;  %v962_v49 = vld [vmem:[#allocation5 + $0x214] ss:$20 sps:$4 sm:$0xff]   ;;  %v964_v51 = vld [vmem:[#allocation5 + $0x210] ss:$20 sps:$4 sm:$0xff]   ;;  %v968_v53 = vld [vmem:[#allocation5 + $0x1ec] ss:$20 sps:$4 sm:$0xff]  }
  0x2e   :  { %622 = vmatprep.subr.bf16.mxu0 %v923_v22  ;;  %665 = vmatprep.subr.bf16.mxu1 %v926_v25  ;;  %v971_v54 = vld [vmem:[#allocation5 + $0x1bc] ss:$20 sps:$4 sm:$0xff]   ;;  %v973_v56 = vld [vmem:[#allocation5 + $0x1b8] ss:$20 sps:$4 sm:$0xff]   ;;  %v977_v58 = vld [vmem:[#allocation5 + $0x194] ss:$20 sps:$4 sm:$0xff]  }
  0x2f   :  { %v970_v55 = vld [vmem:[#allocation5 + $0x1e8] ss:$20 sps:$4 sm:$0xff]   ;;  %v974_v57 = vld [vmem:[#allocation5 + $0x1c4] ss:$20 sps:$4 sm:$0xff]   ;;  %v976_v59 = vld [vmem:[#allocation5 + $0x1c0] ss:$20 sps:$4 sm:$0xff]  }
  0x30   :  { %v979_v60 = vld [vmem:[#allocation5 + $0x190] ss:$20 sps:$4 sm:$0xff]   ;;  %v983_v62 = vld [vmem:[#allocation5 + $0x16c] ss:$20 sps:$4 sm:$0xff]   ;;  %v985_v0 = vld [vmem:[#allocation5 + $0x168] ss:$20 sps:$4 sm:$0xff]  }
  0x31   :  { %623 = vmatpush1.bf16.msra.mxu0 %v925_v24  ;;  %666 = vmatpush1.bf16.msra.mxu1 %v928_v27  ;;  %v980_v61 = vld [vmem:[#allocation5 + $0x19c] ss:$20 sps:$4 sm:$0xff]   ;;  %v982_v63 = vld [vmem:[#allocation5 + $0x198] ss:$20 sps:$4 sm:$0xff]   ;;  %v986_v1 = vld [vmem:[#allocation5 + $0x174] ss:$20 sps:$4 sm:$0xff]  }
  0x32   :  { %624 = vmatprep.subr.bf16.mxu0 %v929_v26  ;;  %667 = vmatprep.subr.bf16.mxu1 %v932_v29  ;;  %v989_v2 = vld [vmem:[#allocation5 + $0x144] ss:$20 sps:$4 sm:$0xff]   ;;  %v991_v4 = vld [vmem:[#allocation5 + $0x140] ss:$20 sps:$4 sm:$0xff]   ;;  %v995_v6 = vld [vmem:[#allocation5 + $0x268] ss:$20 sps:$4 sm:$0xff]  }
  0x33   :  { %v988_v3 = vld [vmem:[#allocation5 + $0x170] ss:$20 sps:$4 sm:$0xff]   ;;  %v992_v5 = vld [vmem:[#allocation5 + $0x14c] ss:$20 sps:$4 sm:$0xff]   ;;  %v994_v7 = vld [vmem:[#allocation5 + $0x148] ss:$20 sps:$4 sm:$0xff]  }
  0x34   :  { %v46_v10 = vld [vmem:[#allocation2] sm:$0xff]  ;;  %v47_v11 = vld [vmem:[#allocation2 + $0x8] sm:$0xff]  ;;  %v48_v12 = vld [vmem:[#allocation2 + $0x10] sm:$0xff]  ;;  %s1087_s0 = smov [#allocation7]  }
  0x35   :  { %625 = vmatpush1.bf16.msra.mxu0 %v931_v28  ;;  %668 = vmatpush1.bf16.msra.mxu1 %v934_v31  ;;  %v49_v13 = vld [vmem:[#allocation2 + $0x18] sm:$0xff]  ;;  %s756_s2 = sshll.u32 %s1087_s0, 4  ;;  %s757_s2 = int_to_ptr.vmem [resolvable:$true] %s756_s2 }
  0x36   :  { %626 = vmatprep.subr.bf16.mxu0 %v935_v30  ;;  %669 = vmatprep.subr.bf16.mxu1 %v938_v33  ;;  %s1051_s29 = scalar_lea.vmem %s757_s2, 1280  ;;  %p1056_p11 = scmp.lt.s32.totalorder %s757_s2, %s757_s2 }
  0x37   :  { %p1052_p10 = scmp.ne.s32.totalorder %s757_s2, %s1051_s29  ;;  %p1057_p12 = scmp.lt.s32.totalorder %s1051_s29, %s1051_s29 }
  0x39   :  { %627 = vmatpush1.bf16.msra.mxu0 %v937_v32  ;;  %670 = vmatpush1.bf16.msra.mxu1 %v940_v35  ;;  %p1058_p13 = por %p1057_p12, %p1056_p11 }
  0x3a   :  { %628 = vmatprep.subr.bf16.mxu0 %v941_v34  ;;  %671 = vmatprep.subr.bf16.mxu1 %v944_v37 }
  0x3b   :  { %p1059_p0 = pnand %p1058_p13, %p1052_p10 }
  0x3d   :  { %629 = vmatpush1.bf16.msra.mxu0 %v943_v36  ;;  %672 = vmatpush1.bf16.msra.mxu1 %v946_v39 }
  0x3e   :  { %630 = vmatprep.subr.bf16.mxu0 %v947_v38  ;;  %673 = vmatprep.subr.bf16.mxu1 %v950_v41  ;;  %v997_v41 = vld [vmem:[#allocation5 + $0x240] ss:$20 sps:$4 sm:$0xff]  }
  0x41   :  { %631 = vmatpush2.bf16.msra.mxu0 %v949_v40  ;;  %674 = vmatpush2.bf16.msra.mxu1 %v952_v43  ;;  %v996_v40 = vld [vmem:[#allocation5 + $0x128] ss:$20 sps:$4 sm:$0xff]   ;;  %v999_v43 = vld [vmem:[#allocation5 + $0x218] ss:$20 sps:$4 sm:$0xff]  }
  0x42   :  { %632 = vmatprep.subr.bf16.mxu0 %v953_v42  ;;  %675 = vmatprep.subr.bf16.mxu1 %v956_v45  ;;  %v998_v42 = vld [vmem:[#allocation5 + $0x100] ss:$20 sps:$4 sm:$0xff]   ;;  %v1001_v45 = vld [vmem:[#allocation5 + $0x1f0] ss:$20 sps:$4 sm:$0xff]  }
  0x45   :  { %633 = vmatpush2.bf16.msra.mxu0 %v955_v44  ;;  %676 = vmatpush2.bf16.msra.mxu1 %v958_v47  ;;  %v1000_v44 = vld [vmem:[#allocation5 + $0xd8] ss:$20 sps:$4 sm:$0xff]   ;;  %v1003_v47 = vld [vmem:[#allocation5 + $0x1c8] ss:$20 sps:$4 sm:$0xff]  }
  0x46   :  { %634 = vmatprep.subr.bf16.mxu0 %v959_v46  ;;  %677 = vmatprep.subr.bf16.mxu1 %v962_v49  ;;  %v1002_v46 = vld [vmem:[#allocation5 + $0xb0] ss:$20 sps:$4 sm:$0xff]   ;;  %v1005_v49 = vld [vmem:[#allocation5 + $0x1a0] ss:$20 sps:$4 sm:$0xff]  }
  0x49   :  { %635 = vmatpush2.bf16.msra.mxu0 %v961_v48  ;;  %678 = vmatpush2.bf16.msra.mxu1 %v964_v51  ;;  %v1004_v48 = vld [vmem:[#allocation5 + $0x88] ss:$20 sps:$4 sm:$0xff]   ;;  %v1007_v51 = vld [vmem:[#allocation5 + $0x178] ss:$20 sps:$4 sm:$0xff]  }
  0x4a   :  { %636 = vmatprep.subr.bf16.mxu0 %v965_v50  ;;  %679 = vmatprep.subr.bf16.mxu1 %v968_v53  ;;  %v1006_v50 = vld [vmem:[#allocation5 + $0x60] ss:$20 sps:$4 sm:$0xff]   ;;  %v1009_v53 = vld [vmem:[#allocation5 + $0x150] ss:$20 sps:$4 sm:$0xff]  }
  0x4d   :  { %637 = vmatpush2.bf16.msra.mxu0 %v967_v52  ;;  %680 = vmatpush2.bf16.msra.mxu1 %v970_v55  ;;  %v1008_v52 = vld [vmem:[#allocation5 + $0x38] ss:$20 sps:$4 sm:$0xff]  }
  0x4e   :  { %638 = vmatprep.subr.bf16.mxu0 %v971_v54  ;;  %681 = vmatprep.subr.bf16.mxu1 %v974_v57  ;;  %v1010_v54 = vld [vmem:[#allocation5 + $0x10] ss:$20 sps:$4 sm:$0xff]  }
  0x51   :  { %639 = vmatpush2.bf16.msra.mxu0 %v973_v56  ;;  %682 = vmatpush2.bf16.msra.mxu1 %v976_v59 }
  0x52   :  { %640 = vmatprep.subr.bf16.mxu0 %v977_v58  ;;  %683 = vmatprep.subr.bf16.mxu1 %v980_v61 }
  0x55   :  { %641 = vmatpush2.bf16.msra.mxu0 %v979_v60  ;;  %684 = vmatpush2.bf16.msra.mxu1 %v982_v63 }
  0x56   :  { %642 = vmatprep.subr.bf16.mxu0 %v983_v62  ;;  %685 = vmatprep.subr.bf16.mxu1 %v986_v1 }
  0x59   :  { %643 = vmatpush2.bf16.msra.mxu0 %v985_v0  ;;  %686 = vmatpush2.bf16.msra.mxu1 %v988_v3 }
  0x5a   :  { %644 = vmatprep.subr.bf16.mxu0 %v989_v2  ;;  %687 = vmatprep.subr.bf16.mxu1 %v992_v5 }
  0x5d   :  { %645 = vmatpush2.bf16.msra.mxu0 %v991_v4  ;;  %688 = vmatpush2.bf16.msra.mxu1 %v994_v7 }
  0x5e   :  { %849 = vmatprep.subr.bf16.mxu0 %v995_v6 }
  0x9a   :  { %v66_v8 = vpop.permute.xlu1 %65  ;;  %v53_v9 = vpop.permute.xlu0 %52 }
  0x9b   :  { %v60_v15 = vmul.f32 %v53_v9, %v46_v10  ;;  %v61_v16 = vmul.f32 %v53_v9, %v47_v11 }
  0x9d   :  { %v72_v20 = vadd.f32 %v66_v8, %v60_v15  ;;  %v73_v21 = vadd.f32 %v66_v8, %v61_v16 }
  0x9e   :  { %v58_v14 = vpop.permute.xlu0 %57  ;;  %v70_v17 = vpop.permute.xlu1 %69 }
  0x9f   :  { %v62_v18 = vmul.f32 %v58_v14, %v48_v12  ;;  %v63_v19 = vmul.f32 %v58_v14, %v49_v13 }
  0xa1   :  { %v74_v22 = vadd.f32 %v70_v17, %v62_v18  ;;  %v75_v23 = vadd.f32 %v70_v17, %v63_v19 }
  0xa3   :  { %v889_v24 = vpop.permute.xlu0 %888  ;;  %v895_v25 = vpop.permute.xlu1 %894 }
  0xa4   :  { %v891_v26 = vunpack.i.h.bf16 %v889_v24  ;;  %v890_v27 = vunpack.i.l.bf16 %v889_v24  ;;  %v897_v28 = vunpack.i.h.bf16 %v895_v25  ;;  %v896_v29 = vunpack.i.l.bf16 %v895_v25 }
  0xa6   :  { %v86_v30 = vmax.f32 %v891_v26, %v74_v22  ;;  %v87_v31 = vmax.f32 %v891_v26, %v75_v23  ;;  %v84_v32 = vmax.f32 %v890_v27, %v72_v20  ;;  %v85_v33 = vmax.f32 %v890_v27, %v73_v21 }
  0xa8   :  { %v96_v34 = vmin.f32 %v896_v29, %v84_v32  ;;  %v97_v35 = vmin.f32 %v896_v29, %v85_v33  ;;  %v98_v36 = vmin.f32 %v897_v28, %v86_v30  ;;  %v99_v37 = vmin.f32 %v897_v28, %v87_v31 }
  0xaa   :  { %v101_v38 = vpack.c.bf16 %v99_v37, %v97_v35  ;;  %v100_v39 = vpack.c.bf16 %v98_v36, %v96_v34 }
  0xac   :  { %646 = vmatprep.mubr.bf16.mxu0 %v101_v38  ;;  %689 = vmatprep.mubr.bf16.mxu1 %v101_v38 }
  0xad   :  { %647 = vmatmul.mubr.bf16.vlgmr.msra.gmra.mxu0 %v100_v39  ;;  %690 = vmatmul.mubr.bf16.vlgmr.msra.gmra.mxu1 %v100_v39 }
  0xae   :  { %850 = vmatpush3.bf16.msra.mxu0 %v996_v40  ;;  %732 = vmatprep.mubr.bf16.mxu0 %v101_v38 }
  0xaf   :  { %851 = vmatprep.subr.bf16.mxu0 %v997_v41 }
  0xb2   :  { %852 = vmatpush3.bf16.msra.mxu0 %v998_v42 }
  0xb3   :  { %853 = vmatprep.subr.bf16.mxu0 %v999_v43 }
  0xb6   :  { %854 = vmatpush3.bf16.msra.mxu0 %v1000_v44 }
  0xb7   :  { %855 = vmatprep.subr.bf16.mxu0 %v1001_v45 }
  0xba   :  { %856 = vmatpush3.bf16.msra.mxu0 %v1002_v46 }
  0xbb   :  { %857 = vmatprep.subr.bf16.mxu0 %v1003_v47 }
  0xbe   :  { %858 = vmatpush3.bf16.msra.mxu0 %v1004_v48 }
  0xbf   :  { %859 = vmatprep.subr.bf16.mxu0 %v1005_v49 }
  0xc2   :  { %860 = vmatpush3.bf16.msra.mxu0 %v1006_v50 }
  0xc3   :  { %861 = vmatprep.subr.bf16.mxu0 %v1007_v51 }
  0xc6   :  { %862 = vmatpush3.bf16.msra.mxu0 %v1008_v52 }
  0xc7   :  { %863 = vmatprep.subr.bf16.mxu0 %v1009_v53 }
  0xca   :  { %864 = vmatpush3.bf16.msra.mxu0 %v1010_v54 }
  0xcd   :  { %733 = vmatmul.mubr.bf16.vlgmr.msra.gmra.mxu0 %v100_v39 }
 0x16d   :  { %v648_v55 = vpop.f32.mrf.mxu0  ;;  %v691_v56 = vpop.f32.mrf.mxu1 }
 0x16e   :  { %741 = vst [vmem:[#allocation7] sm:$0xff] %v648_v55  ;;  %743 = vst [vmem:[#allocation7 + $0x10] sm:$0xff] %v691_v56 }
 0x16f   :  { %v650_v57 = vpop.f32.mrf.mxu0  ;;  %v693_v58 = vpop.f32.mrf.mxu1 }
 0x170   :  { %742 = vst [vmem:[#allocation7 + $0x8] sm:$0xff] %v650_v57  ;;  %744 = vst [vmem:[#allocation7 + $0x18] sm:$0xff] %v693_v58 }
 0x171   :  { %v652_v59 = vpop.f32.mrf.mxu0  ;;  %v695_v60 = vpop.f32.mrf.mxu1 }
 0x172   :  { %746 = vst [vmem:[#allocation7 + $0x28] sm:$0xff] %v652_v59  ;;  %748 = vst [vmem:[#allocation7 + $0x38] sm:$0xff] %v695_v60 }
 0x173   :  { %v654_v61 = vpop.f32.mrf.mxu0  ;;  %v697_v62 = vpop.f32.mrf.mxu1 }
 0x174   :  { %747 = vst [vmem:[#allocation7 + $0x30] sm:$0xff] %v654_v61  ;;  %749 = vst [vmem:[#allocation7 + $0x40] sm:$0xff] %v697_v62 }
 0x18d   :  { %v865_v63 = vpop.f32.mrf.mxu0 }
 0x18f   :  { %v866_v0 = vpop.f32.mrf.mxu0 }
 0x190   :  { %v867_v1 = vadd.f32 %v866_v0, %v865_v63 }
 0x191   :  { %v868_v2 = vpop.f32.mrf.mxu0 }
 0x192   :  { %745 = vst [vmem:[#allocation7 + $0x20] sm:$0xff] %v867_v1 }
 0x193   :  { %v869_v3 = vpop.f32.mrf.mxu0 }
 0x194   :  { %v870_v4 = vadd.f32 %v869_v3, %v868_v2 }
 0x196   :  { %750 = vst [vmem:[#allocation7 + $0x48] sm:$0xff] %v870_v4 }
 0x197   :  { %1062 = shalt.err (!%p1059_p0)
}
 0x198   :  { %s1088_s30 = smov 640   ;;  %s1089_s4 = smov 40  }
 0x199   :  { %762 = dma.vmem_to_hbm [thread:$0]  %s757_s2, 1280, %s1128_s3, [#allocation4], %s1088_s30, %s1088_s30, %s1089_s4  }
 0x19a   :  { %1075 = dma.done.wait [#allocation4], 1280  }
 0x19b   :  { %1076 = vsyncadd [#allocation4], 4294966016 }
 0x19c   :  { %766 = vsyncpa [#allocation3], 1 }
 0x19d   :  { %767 = vsyncpa [#allocation6], 1 }
 0x19e   :  { %768 = vsyncpa [#allocation4], 1 }

</bundles_post_ra>
